<compile_context>
chip_gen: v7x
topology: tpu7x:2x2x1
jax: 0.10.0
libtpu: 0.0.40
codegen_flags: <defaults>
</compile_context>

<pallas_src>
import math
import jax
import jax.numpy as jnp
from jax.experimental import pallas as pl
from jax.experimental.pallas import tpu as pltpu


def _gmm_logprob_kernel(x_ref, quad_ref, lin_ref, bias_ref, o_ref):
    # x_ref:    (TN, D)  input tile in native layout
    # quad_ref: (K, D)   -0.5 * inv_var
    # lin_ref:  (K, D)   mu * inv_var
    # bias_ref: (K, 1)   per-component constant (log-weight + Gaussian norm.)
    # o_ref:    (1, TN)  mixture log-likelihood per sample (lane-dense)
    x = x_ref[...]                                            # (TN, D)
    # Contract (K, D) params with (TN, D) features over D -> (K, TN):
    # samples land on the 128 lanes, K sits on sublanes.
    logp = jnp.einsum("kd,nd->kn", quad_ref[...], x * x,
                      preferred_element_type=jnp.float32)     # (K, TN)
    logp = logp + jnp.einsum("kd,nd->kn", lin_ref[...], x,
                             preferred_element_type=jnp.float32)
    logp = logp + bias_ref[...]                               # (K,1) bcast over lanes
    # logsumexp over components (K on the sublane axis -> cheap per-lane reduce)
    m = jnp.max(logp, axis=0, keepdims=True)                  # (1, TN)
    s = jnp.sum(jnp.exp(logp - m), axis=0, keepdims=True)     # (1, TN)
    o_ref[...] = m + jnp.log(s)


def _round_up(a, b):
    return (a + b - 1) // b * b


def mixture_log_prob(x, logits, mus, log_sigmas, *, target_block_bytes=4 << 20):
    """x: (N, D) f32. logits: (K,). mus, log_sigmas: (K, D). Returns (N,) f32."""
    N, D = x.shape
    K = logits.shape[0]

    # --- glue: fold all per-component constants into (K, D) params + (K, 1) bias
    inv_var = jnp.exp(-2.0 * log_sigmas)                              # (K, D)
    log_w = jax.nn.log_softmax(logits)                                # (K,)
    quad = (-0.5 * inv_var).astype(jnp.float32)                       # (K, D)
    lin = (mus * inv_var).astype(jnp.float32)                         # (K, D)
    bias = (
        log_w
        - 0.5 * jnp.sum(mus * mus * inv_var, axis=-1)                 # -0.5 mu^T S^-1 mu
        - jnp.sum(log_sigmas, axis=-1)                                # -sum log sigma
        - 0.5 * D * math.log(2.0 * math.pi)
    ).reshape(K, 1).astype(jnp.float32)

    x32 = x.astype(jnp.float32)

    # --- tile selection: ~target_block_bytes of x per grid step, lane-multiple
    # of 128, never larger than needed; ragged tail handled by Pallas masking.
    tile = target_block_bytes // (D * 4)
    tile = max(128, min(tile, 1 << 16, _round_up(N, 128)))
    tile = (tile // 128) * 128
    grid = pl.cdiv(N, tile)

    cost = pl.CostEstimate(
        flops=4 * N * D * K,                       # two (K,D)x(D,N) matmuls
        transcendentals=N * (K + 1),               # exp per component + log
        bytes_accessed=N * D * 4 + N * 4 + (2 * K * D + K) * 4,
    )

    out = pl.pallas_call(
        _gmm_logprob_kernel,
        out_shape=jax.ShapeDtypeStruct((1, N), jnp.float32),
        grid_spec=pltpu.PrefetchScalarGridSpec(
            num_scalar_prefetch=0,
            grid=(grid,),
            in_specs=[
                pl.BlockSpec((tile, D), lambda i: (i, 0)),   # x: native layout
                pl.BlockSpec((K, D), lambda i: (0, 0)),      # quad params
                pl.BlockSpec((K, D), lambda i: (0, 0)),      # linear params
                pl.BlockSpec((K, 1), lambda i: (0, 0)),      # bias
            ],
            out_specs=pl.BlockSpec((1, tile), lambda i: (0, i)),
        ),
        compiler_params=pltpu.CompilerParams(
            dimension_semantics=("parallel",),
            vmem_limit_bytes=48 << 20,
        ),
        cost_estimate=cost,
    )(x32, quad, lin, bias)
    return out[0]


def _reference_log_prob(x, logits, mus, log_sigmas):
    # pure-JAX reference of MixtureSameFamily(Independent(Normal)) log_prob
    sig = jnp.exp(log_sigmas)                                         # (K, D)
    diff = x[:, None, :] - mus[None, :, :]                            # (N, K, D)
    comp = jnp.sum(
        -0.5 * (diff / sig) ** 2 - log_sigmas - 0.5 * math.log(2.0 * math.pi),
        axis=-1,
    )                                                                 # (N, K)
    return jax.nn.logsumexp(comp + jax.nn.log_softmax(logits)[None, :], axis=-1)


if __name__ == "__main__":
    key = jax.random.PRNGKey(0)
    k_x, k_mu = jax.random.split(key)

    num_components = 8       # K
    num_dims = 32            # D
    init_radius = 1.0
    N = 256                  # number of samples

    # Deterministic parameter init (mirrors __init__ shapes):
    #   logits = zeros(K); mus ~ U(-r, r); log_sigmas = 0
    logits = jnp.zeros((num_components,), jnp.float32)
    mus = jax.random.uniform(
        k_mu, (num_components, num_dims), jnp.float32,
        minval=-init_radius, maxval=init_radius,
    )
    log_sigmas = jnp.zeros((num_components, num_dims), jnp.float32)

    x = jax.random.normal(k_x, (N, num_dims), jnp.float32)

    out = mixture_log_prob(x, logits, mus, log_sigmas)
    out = jax.block_until_ready(out)

    ref = _reference_log_prob(x, logits, mus, log_sigmas)
    assert out.shape == (N,)
    assert jnp.allclose(out, ref, atol=1e-4, rtol=1e-4), float(
        jnp.max(jnp.abs(out - ref))
    )
    print("KERNEL_OK")
</pallas_src>

<mosaic_0001>
module attributes {stable_mosaic.version = 11 : i64} {
  func.func @_gmm_logprob_kernel(%arg0: i32, %arg1: memref<256x32xf32, #tpu.memory_space<vmem>>, %arg2: memref<8x32xf32, #tpu.memory_space<vmem>>, %arg3: memref<8x32xf32, #tpu.memory_space<vmem>>, %arg4: memref<8x1xf32, #tpu.memory_space<vmem>>, %arg5: memref<1x256xf32, #tpu.memory_space<vmem>>) attributes {dimension_semantics = [#tpu.dimension_semantics<parallel>], iteration_bounds = array<i64: 1>, scalar_prefetch = 0 : i64, scratch_operands = 0 : i64, tpu.core_type = #tpu.core_type<tc>, window_params = [{transform_indices = @transform_0, window_bounds = array<i64: 256, 32>}, {pipeline_mode = #tpu.pipeline_mode<synchronous>, transform_indices = @transform_1, window_bounds = array<i64: 8, 32>}, {pipeline_mode = #tpu.pipeline_mode<synchronous>, transform_indices = @transform_2, window_bounds = array<i64: 8, 32>}, {pipeline_mode = #tpu.pipeline_mode<synchronous>, transform_indices = @transform_3, window_bounds = array<i64: 8, 1>}, {transform_indices = @transform_4, window_bounds = array<i64: 1, 256>}]} {
    %c0 = arith.constant 0 : index
    %c0_0 = arith.constant 0 : index
    %0 = vector.load %arg1[%c0, %c0_0] : memref<256x32xf32, #tpu.memory_space<vmem>>, vector<256x32xf32>
    %c0_1 = arith.constant 0 : index
    %c0_2 = arith.constant 0 : index
    %1 = vector.load %arg2[%c0_1, %c0_2] : memref<8x32xf32, #tpu.memory_space<vmem>>, vector<8x32xf32>
    %2 = arith.mulf %0, %0 : vector<256x32xf32>
    "tpu.trace_start"() <{level = 10 : i32, message = "kd,nd->kn"}> : () -> ()
    %cst = arith.constant dense<0.000000e+00> : vector<8x256xf32>
    %3 = tpu.matmul %1, %2, %cst {dimension_numbers = #tpu.dot_dimension_numbers<[1], [1], [0], [0], [0, 0, 1, 0], [], []>} : vector<8x32xf32>, vector<256x32xf32>, vector<8x256xf32> -> vector<8x256xf32>
    "tpu.trace_stop"() : () -> ()
    %c0_3 = arith.constant 0 : index
    %c0_4 = arith.constant 0 : index
    %4 = vector.load %arg3[%c0_3, %c0_4] : memref<8x32xf32, #tpu.memory_space<vmem>>, vector<8x32xf32>
    "tpu.trace_start"() <{level = 10 : i32, message = "kd,nd->kn"}> : () -> ()
    %cst_5 = arith.constant dense<0.000000e+00> : vector<8x256xf32>
    %5 = tpu.matmul %4, %0, %cst_5 {dimension_numbers = #tpu.dot_dimension_numbers<[1], [1], [0], [0], [0, 0, 1, 0], [], []>} : vector<8x32xf32>, vector<256x32xf32>, vector<8x256xf32> -> vector<8x256xf32>
    "tpu.trace_stop"() : () -> ()
    %6 = arith.addf %3, %5 : vector<8x256xf32>
    %c0_6 = arith.constant 0 : index
    %c0_7 = arith.constant 0 : index
    %7 = vector.load %arg4[%c0_6, %c0_7] : memref<8x1xf32, #tpu.memory_space<vmem>>, vector<8x1xf32>
    %8 = vector.broadcast %7 : vector<8x1xf32> to vector<8x256xf32>
    %9 = arith.addf %6, %8 : vector<8x256xf32>
    %cst_8 = arith.constant dense<0xFF800000> : vector<256xf32>
    %10 = vector.multi_reduction <maximumf>, %9, %cst_8 [0] : vector<8x256xf32> to vector<256xf32>
    %11 = vector.shape_cast %10 : vector<256xf32> to vector<1x256xf32>
    %12 = vector.broadcast %11 : vector<1x256xf32> to vector<8x256xf32>
    %13 = arith.subf %9, %12 : vector<8x256xf32>
    %14 = math.exp %13 : vector<8x256xf32>
    %cst_9 = arith.constant dense<0.000000e+00> : vector<256xf32>
    %15 = vector.multi_reduction <add>, %14, %cst_9 [0] : vector<8x256xf32> to vector<256xf32>
    %16 = vector.shape_cast %15 : vector<256xf32> to vector<1x256xf32>
    %17 = math.log %16 : vector<1x256xf32>
    %18 = arith.addf %11, %17 : vector<1x256xf32>
    %c0_10 = arith.constant 0 : index
    %c0_11 = arith.constant 0 : index
    %19 = vector.load %arg5[%c0_10, %c0_11] : memref<1x256xf32, #tpu.memory_space<vmem>>, vector<1x256xf32>
    tpu.vector_store %arg5[%c0_10, %c0_11], %18 {strides = array<i32>} : memref<1x256xf32, #tpu.memory_space<vmem>>, vector<1x256xf32>,
    return
  }
  func.func @transform_0(%arg0: i32) -> (i32, i32) {
    %c0_i32 = arith.constant 0 : i32
    %c0_i32_0 = arith.constant 0 : i32
    return %arg0, %c0_i32 : i32, i32
  }
  func.func @transform_1(%arg0: i32) -> (i32, i32) {
    %c0_i32 = arith.constant 0 : i32
    %c0_i32_0 = arith.constant 0 : i32
    %c0_i32_1 = arith.constant 0 : i32
    return %c0_i32, %c0_i32_0 : i32, i32
  }
  func.func @transform_2(%arg0: i32) -> (i32, i32) {
    %c0_i32 = arith.constant 0 : i32
    %c0_i32_0 = arith.constant 0 : i32
    %c0_i32_1 = arith.constant 0 : i32
    return %c0_i32, %c0_i32_0 : i32, i32
  }
  func.func @transform_3(%arg0: i32) -> (i32, i32) {
    %c0_i32 = arith.constant 0 : i32
    %c0_i32_0 = arith.constant 0 : i32
    %c0_i32_1 = arith.constant 0 : i32
    return %c0_i32, %c0_i32_0 : i32, i32
  }
  func.func @transform_4(%arg0: i32) -> (i32, i32) {
    %c0_i32 = arith.constant 0 : i32
    %c0_i32_0 = arith.constant 0 : i32
    return %c0_i32, %arg0 : i32, i32
  }
}

</mosaic_0001>

<bundles_post_ra>
// kernel: tpu_custom_call.1
= control target key start
LH: loop header
LB: loop body
LE: loop exit
PB: predicated region body
PF: predicated region fallthrough
CT: control target
= control target key end

     0   :  { %vm84_vm0 = vcmask 261120   ;;  %v774_v10 = vmov 0   ;;  %s1001_s0 = inlined_call_operand.vmem [shape: f32[256,32], index: 0, kind: input, shape index: {}]   ;;  %s1002_s1 = inlined_call_operand.vmem [shape: f32[8,32], index: 1, kind: input, shape index: {}]   ;;  %s1003_s2 = inlined_call_operand.vmem [shape: f32[8,32], index: 2, kind: input, shape index: {}]   ;;  %s1004_s3 = inlined_call_operand.vmem [shape: f32[8,1], index: 3, kind: input, shape index: {}]   ;;  %s1005_s4 = inlined_call_operand.hbm [shape: f32[1,256], index: 4, kind: output, shape index: {}]  }
   0x1   :  { %v34_v0 = vld [vmem:[%s1001_s0 + $0x80] sm:$0xff]  ;;  %v35_v1 = vld [vmem:[%s1001_s0 + $0x88] sm:$0xff]  ;;  %vm813_vm1 = vmpackc.low %vm84_vm0, %vm84_vm0  ;;  %741 = vset.pattern.permute.xlu0 %v774_v10 }
   0x2   :  { %v18_v2 = vld [vmem:[%s1001_s0] sm:$0xff]  ;;  %v640_v3 = vpack.c.bf16 %v35_v1, %v34_v0  ;;  %v19_v5 = vld [vmem:[%s1001_s0 + $0x8] sm:$0xff]  ;;  %v67_v6 = vmul.f32 %v34_v0, %v34_v0  ;;  %v68_v7 = vmul.f32 %v35_v1, %v35_v1  ;;  %v36_v9 = vld [vmem:[%s1001_s0 + $0x90] sm:$0xff] }
   0x3   :  { %v51_v8 = vmul.f32 %v18_v2, %v18_v2  ;;  %v643_v11 = vpack.c.bf16 %v19_v5, %v18_v2  ;;  %v52_v12 = vmul.f32 %v19_v5, %v19_v5  ;;  %v37_v13 = vld [vmem:[%s1001_s0 + $0x98] sm:$0xff]  ;;  %v69_v14 = vmul.f32 %v36_v9, %v36_v9  ;;  %v20_v17 = vld [vmem:[%s1001_s0 + $0x10] sm:$0xff]  ;;  %v38_v21 = vld [vmem:[%s1001_s0 + $0xa0] sm:$0xff] }
   0x4   :  { %642 = vmatprep.subr.msk.bf16.mxu1 %vm813_vm1, %v640_v3  ;;  %v688_v15 = vpack.c.bf16 %v68_v7, %v67_v6  ;;  %v646_v16 = vpack.c.bf16 %v37_v13, %v36_v9  ;;  %v21_v18 = vld [vmem:[%s1001_s0 + $0x18] sm:$0xff]  ;;  %v70_v19 = vmul.f32 %v37_v13, %v37_v13  ;;  %v39_v22 = vld [vmem:[%s1001_s0 + $0xa8] sm:$0xff]  ;;  %v53_v24 = vmul.f32 %v20_v17, %v20_v17  ;;  %v22_v31 = vld [vmem:[%s1001_s0 + $0x20] sm:$0xff] }
   0x5   :  { %645 = vmatpush3.bf16.xpose.msk.msra.mxu1 %vm813_vm1, %v643_v11  ;;  %v691_v20 = vpack.c.bf16 %v52_v12, %v51_v8  ;;  %v54_v25 = vmul.f32 %v21_v18, %v21_v18  ;;  %v71_v26 = vmul.f32 %v38_v21, %v38_v21  ;;  %v72_v27 = vmul.f32 %v39_v22, %v39_v22  ;;  %v23_v32 = vld [vmem:[%s1001_s0 + $0x28] sm:$0xff]  ;;  %v40_v34 = vld [vmem:[%s1001_s0 + $0xb0] sm:$0xff]  ;;  %v41_v35 = vld [vmem:[%s1001_s0 + $0xb8] sm:$0xff] }
   0x6   :  { %690 = vmatprep.subr.msk.bf16.mxu0 %vm813_vm1, %v688_v15  ;;  %648 = vmatprep.subr.msk.bf16.mxu1 %vm813_vm1, %v646_v16  ;;  %v694_v23 = vpack.c.bf16 %v70_v19, %v69_v14  ;;  %v649_v28 = vpack.c.bf16 %v21_v18, %v20_v17  ;;  %v652_v29 = vpack.c.bf16 %v39_v22, %v38_v21 }
   0x7   :  { %693 = vmatpush3.bf16.xpose.msk.msra.mxu0 %vm813_vm1, %v691_v20  ;;  %v697_v30 = vpack.c.bf16 %v54_v25, %v53_v24  ;;  %v700_v33 = vpack.c.bf16 %v72_v27, %v71_v26 }
   0x8   :  { %696 = vmatprep.subr.msk.bf16.mxu0 %vm813_vm1, %v694_v23 }
   0xd   :  { %651 = vmatpush3.bf16.xpose.msk.msra.mxu1 %vm813_vm1, %v649_v28 }
   0xe   :  { %9 = vsyncpa [#allocation3], 0  ;;  %654 = vmatprep.subr.msk.bf16.mxu1 %vm813_vm1, %v652_v29  ;;  %v869_v36 = vld [vmem:[%s1003_s2] sm:$0xff]  ;;  %v55_v37 = vmul.f32 %v22_v31, %v22_v31  ;;  %v56_v38 = vmul.f32 %v23_v32, %v23_v32  ;;  %v73_v41 = vmul.f32 %v40_v34, %v40_v34  ;;  %v74_v42 = vmul.f32 %v41_v35, %v41_v35  ;;  %v24_v46 = vld [vmem:[%s1001_s0 + $0x30] sm:$0xff] }
   0xf   :  { %699 = vmatpush3.bf16.xpose.msk.msra.mxu0 %vm813_vm1, %v697_v30  ;;  %v876_v39 = vld [vmem:[%s1002_s1] sm:$0xff]  ;;  %v655_v43 = vpack.c.bf16 %v23_v32, %v22_v31  ;;  %604 = vmatprep.mubr.msk.f32.mxu1 %vm84_vm0, %v869_v36  ;;  %v658_v44 = vpack.c.bf16 %v41_v35, %v40_v34  ;;  %v25_v47 = vld [vmem:[%s1001_s0 + $0x38] sm:$0xff]  ;;  %v43_v50 = vld [vmem:[%s1001_s0 + $0xc8] sm:$0xff]  ;;  %v57_v51 = vmul.f32 %v24_v46, %v24_v46 }
  0x10   :  { %v425_v40 = vld [vmem:[%s1004_s3] sm:$0xff]  ;;  %702 = vmatprep.subr.msk.bf16.mxu0 %vm813_vm1, %v700_v33  ;;  %638 = vmatprep.mubr.msk.f32.mxu0 %vm84_vm0, %v876_v39  ;;  %v703_v45 = vpack.c.bf16 %v56_v38, %v55_v37  ;;  %v706_v48 = vpack.c.bf16 %v74_v42, %v73_v41  ;;  %v58_v52 = vmul.f32 %v25_v47, %v25_v47  ;;  %v27_v59 = vld [vmem:[%s1001_s0 + $0x48] sm:$0xff]  ;;  %v44_v61 = vld [vmem:[%s1001_s0 + $0xd0] sm:$0xff] }
  0x11   :  { %428 = vperm.xlu0 %741, %v425_v40   ;;  %v42_v49 = vld [vmem:[%s1001_s0 + $0xc0] sm:$0xff]  ;;  %v76_v54 = vmul.f32 %v43_v50, %v43_v50  ;;  %v661_v55 = vpack.c.bf16 %v25_v47, %v24_v46  ;;  %v45_v62 = vld [vmem:[%s1001_s0 + $0xd8] sm:$0xff]  ;;  %v60_v0 = vmul.f32 %v27_v59, %v27_v59  ;;  %v77_v1 = vmul.f32 %v44_v61, %v44_v61  ;;  %v28_v7 = vld [vmem:[%s1001_s0 + $0x50] sm:$0xff] }
  0x12   :  { %v75_v53 = vmul.f32 %v42_v49, %v42_v49  ;;  %v664_v56 = vpack.c.bf16 %v43_v50, %v42_v49  ;;  %v709_v57 = vpack.c.bf16 %v58_v52, %v57_v51  ;;  %v26_v58 = vld [vmem:[%s1001_s0 + $0x40] sm:$0xff]  ;;  %v78_v2 = vmul.f32 %v45_v62, %v45_v62  ;;  %v29_v8 = vld [vmem:[%s1001_s0 + $0x58] sm:$0xff]  ;;  %v47_v11 = vld [vmem:[%s1001_s0 + $0xe8] sm:$0xff] }
  0x13   :  { %v59_v63 = vmul.f32 %v26_v58, %v26_v58  ;;  %v667_v3 = vpack.c.bf16 %v27_v59, %v26_v58  ;;  %v670_v5 = vpack.c.bf16 %v45_v62, %v44_v61  ;;  %v46_v10 = vld [vmem:[%s1001_s0 + $0xe0] sm:$0xff]  ;;  %v61_v12 = vmul.f32 %v28_v7, %v28_v7  ;;  %v31_v20 = vld [vmem:[%s1001_s0 + $0x68] sm:$0xff]  ;;  %v48_v22 = vld [vmem:[%s1001_s0 + $0xf0] sm:$0xff] }
  0x14   :  { %v712_v60 = vpack.c.bf16 %v76_v54, %v75_v53  ;;  %v718_v9 = vpack.c.bf16 %v78_v2, %v77_v1  ;;  %v62_v13 = vmul.f32 %v29_v8, %v29_v8  ;;  %v79_v14 = vmul.f32 %v46_v10, %v46_v10  ;;  %v30_v19 = vld [vmem:[%s1001_s0 + $0x60] sm:$0xff]  ;;  %v49_v23 = vld [vmem:[%s1001_s0 + $0xf8] sm:$0xff]  ;;  %v32_v31 = vld [vmem:[%s1001_s0 + $0x70] sm:$0xff] }
  0x15   :  { %657 = vmatpush3.bf16.xpose.msk.msra.mxu1 %vm813_vm1, %v655_v43  ;;  %v715_v6 = vpack.c.bf16 %v60_v0, %v59_v63  ;;  %v80_v15 = vmul.f32 %v47_v11, %v47_v11  ;;  %v673_v16 = vpack.c.bf16 %v29_v8, %v28_v7  ;;  %v676_v17 = vpack.c.bf16 %v47_v11, %v46_v10  ;;  %v33_v32 = vld [vmem:[%s1001_s0 + $0x78] sm:$0xff]  ;;  %s776_s0 = smov [#allocation2]  }
  0x16   :  { %660 = vmatprep.subr.msk.bf16.mxu1 %vm813_vm1, %v658_v44  ;;  %v721_v18 = vpack.c.bf16 %v62_v13, %v61_v12  ;;  %v63_v24 = vmul.f32 %v30_v19, %v30_v19  ;;  %v64_v25 = vmul.f32 %v31_v20, %v31_v20  ;;  %v81_v26 = vmul.f32 %v48_v22, %v48_v22  ;;  %s498_s27 = sshll.u32 %s776_s0, 4  ;;  %s499_s27 = int_to_ptr.vmem [resolvable:$true] %s498_s27 }
  0x17   :  { %705 = vmatpush3.bf16.xpose.msk.msra.mxu0 %vm813_vm1, %v703_v45  ;;  %v724_v21 = vpack.c.bf16 %v80_v15, %v79_v14  ;;  %v82_v27 = vmul.f32 %v49_v23, %v49_v23  ;;  %v679_v28 = vpack.c.bf16 %v31_v20, %v30_v19  ;;  %v682_v29 = vpack.c.bf16 %v49_v23, %v48_v22  ;;  %s750_s28 = scalar_lea.vmem %s499_s27, 32  ;;  %p755_p1 = scmp.lt.s32.totalorder %s499_s27, %s499_s27 }
  0x18   :  { %708 = vmatprep.subr.msk.bf16.mxu0 %vm813_vm1, %v706_v48  ;;  %v727_v30 = vpack.c.bf16 %v64_v25, %v63_v24  ;;  %v65_v34 = vmul.f32 %v32_v31, %v32_v31  ;;  %v66_v35 = vmul.f32 %v33_v32, %v33_v32  ;;  %v685_v37 = vpack.c.bf16 %v33_v32, %v32_v31  ;;  %p751_p0 = scmp.ne.s32.totalorder %s499_s27, %s750_s28  ;;  %p756_p2 = scmp.lt.s32.totalorder %s750_s28, %s750_s28 }
  0x19   :  { %v730_v33 = vpack.c.bf16 %v82_v27, %v81_v26  ;;  %v775_v13 = vmov 1966171168   ;;  %v475_v15 = vlaneseq }
  0x1a   :  { %v733_v38 = vpack.c.bf16 %v66_v35, %v65_v34  ;;  %v473_v14 = vunpack.c.l.s4 %v775_v13  ;;  %p757_p3 = por %p756_p2, %p755_p1 }
  0x1b   :  { %vm489_vm2 = vcmp.lt.s32.totalorder %v475_v15, 256 }
  0x1c   :  { %p758_p4 = pnand %p757_p3, %p751_p0 }
  0x1d   :  { %663 = vmatpush3.bf16.xpose.msk.msra.mxu1 %vm813_vm1, %v661_v55 }
  0x1e   :  { %666 = vmatprep.subr.msk.bf16.mxu1 %vm813_vm1, %v664_v56 }
  0x1f   :  { %711 = vmatpush3.bf16.xpose.msk.msra.mxu0 %vm813_vm1, %v709_v57 }
  0x20   :  { %714 = vmatprep.subr.msk.bf16.mxu0 %vm813_vm1, %v712_v60 }
  0x25   :  { %669 = vmatpush3.bf16.xpose.msk.msra.mxu1 %vm813_vm1, %v667_v3 }
  0x26   :  { %672 = vmatprep.subr.msk.bf16.mxu1 %vm813_vm1, %v670_v5 }
  0x27   :  { %717 = vmatpush3.bf16.xpose.msk.msra.mxu0 %vm813_vm1, %v715_v6 }
  0x28   :  { %720 = vmatprep.subr.msk.bf16.mxu0 %vm813_vm1, %v718_v9 }
  0x2d   :  { %675 = vmatpush3.bf16.xpose.msk.msra.mxu1 %vm813_vm1, %v673_v16 }
  0x2e   :  { %678 = vmatprep.subr.msk.bf16.mxu1 %vm813_vm1, %v676_v17  ;;  %v474_v17 = vunpack.c.0.s8 %v473_v14 }
  0x2f   :  { %723 = vmatpush3.bf16.xpose.msk.msra.mxu0 %vm813_vm1, %v721_v18  ;;  %v476_v18 = vshrl.u32 %v475_v15, 7 }
  0x30   :  { %726 = vmatprep.subr.msk.bf16.mxu0 %vm813_vm1, %v724_v21 }
  0x31   :  { %v477_v24 = vsub.s32 %v474_v17, %v476_v18 }
  0x35   :  { %681 = vmatpush3.bf16.xpose.msk.msra.mxu1 %vm813_vm1, %v679_v28 }
  0x36   :  { %684 = vmatprep.subr.msk.bf16.mxu1 %vm813_vm1, %v682_v29 }
  0x37   :  { %729 = vmatpush3.bf16.xpose.msk.msra.mxu0 %vm813_vm1, %v727_v30 }
  0x38   :  { %732 = vmatprep.subr.msk.bf16.mxu0 %vm813_vm1, %v730_v33 }
  0x3d   :  { %687 = vmatpush3.bf16.xpose.msk.msra.mxu1 %vm813_vm1, %v685_v37 }
  0x3f   :  { %735 = vmatpush3.bf16.xpose.msk.msra.mxu0 %vm813_vm1, %v733_v38 }
  0x44   :  { %605 = vmatmul.mubr.msk.f32.vlgmr.msra.gmra.mrb[0].mxu1 %vm84_vm0, %v869_v36 }
  0x46   :  { %639 = vmatmul.mubr.msk.f32.vlgmr.msra.gmra.mrb[0].mxu0 %vm84_vm0, %v876_v39 }
  0x90   :  { %v429_v43 = vpop.permute.xlu0 %428 }
 0x117   :  { %v250_v40 = vpop.f32.mrb[0].mxu1 }
 0x118   :  { %v252_v41 = vpop.f32.mrb[1].mxu1 }
 0x119   :  { %v420_v42 = vpop.f32.mrb[0].mxu0 }
 0x11a   :  { %v421_v44 = vadd.f32 %v420_v42, %v250_v40  ;;  %v422_v45 = vpop.f32.mrb[1].mxu0 }
 0x11b   :  { %v423_v46 = vadd.f32 %v422_v45, %v252_v41 }
 0x11c   :  { %v431_v47 = vadd.f32 %v429_v43, %v421_v44 }
 0x11d   :  { %v432_v48 = vadd.f32 %v429_v43, %v423_v46 }
 0x11e   :  { %v433_v49 = vrot.slane %v431_v47, 4 }
 0x11f   :  { %v439_v50 = vrot.slane %v432_v48, 4 }
 0x120   :  { %v434_v51 = vmax.f32 %v431_v47, %v433_v49 }
 0x121   :  { %v440_v4 = vmax.f32 %v432_v48, %v439_v50 }
 0x122   :  { %v435_v52 = vrot.slane %v434_v51, 2 }
 0x123   :  { %v441_v53 = vrot.slane %v440_v4, 2 }
 0x124   :  { %v436_v54 = vmax.f32 %v434_v51, %v435_v52 }
 0x125   :  { %v442_v36 = vmax.f32 %v440_v4, %v441_v53 }
 0x126   :  { %v437_v55 = vrot.slane %v436_v54, 1 }
 0x127   :  { %v443_v56 = vrot.slane %v442_v36, 1 }
 0x128   :  { %v438_v39 = vmax.f32 %v436_v54, %v437_v55 }
 0x129   :  { %v444_v57 = vmax.f32 %v442_v36, %v443_v56 }
 0x12a   :  { %v445_v58 = vsub.f32 %v431_v47, %v438_v39 }
 0x12b   :  { %v446_v59 = vsub.f32 %v432_v48, %v444_v57 }
 0x12c   :  { %v447_v60 = vmul.f32 1.442695, %v445_v58 }
 0x12d   :  { %v449_v61 = vmul.f32 1.442695, %v446_v59 }
 0x12e   :  { %742 = vpow2.f32 %v447_v60 }
 0x12f   :  { %744 = vpow2.f32 %v449_v61 }
 0x138   :  { %v743_v62 = vpop.eup %742 }
 0x139   :  { %v745_v63 = vpop.eup %744  ;;  %v451_v0 = vrot.slane %v743_v62, 4 }
 0x13a   :  { %v457_v1 = vrot.slane %v745_v63, 4 }
 0x13b   :  { %v452_v2 = vadd.f32 %v743_v62, %v451_v0 }
 0x13c   :  { %v458_v3 = vadd.f32 %v745_v63, %v457_v1 }
 0x13d   :  { %v453_v5 = vrot.slane %v452_v2, 2 }
 0x13e   :  { %v459_v6 = vrot.slane %v458_v3, 2 }
 0x13f   :  { %v454_v7 = vadd.f32 %v453_v5, %v452_v2 }
 0x140   :  { %v460_v8 = vadd.f32 %v459_v6, %v458_v3 }
 0x141   :  { %v455_v9 = vrot.slane %v454_v7, 1 }
 0x142   :  { %v461_v10 = vrot.slane %v460_v8, 1 }
 0x143   :  { %v456_v11 = vadd.f32 %v455_v9, %v454_v7 }
 0x144   :  { %v462_v12 = vadd.f32 %v461_v10, %v460_v8 }
 0x145   :  { %746 = vlog2.f32 %v456_v11 }
 0x146   :  { %748 = vlog2.f32 %v462_v12 }
 0x14f   :  { %v747_v16 = vpop.eup %746 }
 0x150   :  { %v749_v19 = vpop.eup %748  ;;  %v464_v20 = vmul.f32 0.6931472, %v747_v16 }
 0x151   :  { %v466_v21 = vmul.f32 0.6931472, %v749_v19 }
 0x152   :  { %v467_v22 = vadd.f32 %v464_v20, %v438_v39 }
 0x153   :  { %v468_v23 = vadd.f32 %v466_v21, %v444_v57 }
 0x155   :  { %v471_v25 = vcombine.low %v467_v22, %v468_v23 }
 0x157   :  { %v478_v26 = vrot.slane %v471_v25, %v477_v24 }
 0x159   :  { %v485_v27 = vrot.slane %v478_v26, %v477_v24 }
 0x15b   :  { %491 = vst.msk [vmem:[#allocation2] sm:$0x3] %vm489_vm2, %v485_v27 }
 0x15c   :  { %761 = shalt.err (!%p758_p4)
}
 0x15d   :  { %s762_s5 = scalar_lea.hbm %s1005_s4, 32 }
 0x15e   :  { %p763_p5 = scmp.ne.s32.totalorder %s1005_s4, %s762_s5  ;;  %p766_p6 = scmp.lt.u32.totalorder %s762_s5, %s1005_s4 }
 0x160   :  { %p768_p7 = pnand %p766_p6, %p763_p5 }
 0x162   :  { %771 = shalt.err (!%p768_p7)
}
 0x163   :  { %501 = dma.vmem_to_hbm [thread:$0]  %s499_s27, 32, %s1005_s4, [#allocation3]  }
 0x164   :  { %772 = dma.done.wait [#allocation3], 32  }
 0x165   :  { %773 = vsyncadd [#allocation3], 4294967264 }
 0x166   :  { %505 = vsyncpa [#allocation3], 1 }

</bundles_post_ra>
